<compile_context>
chip_gen: v7x
topology: tpu7x:2x2x1
jax: 0.10.0
libtpu: 0.0.40
codegen_flags: <defaults>
</compile_context>

<pallas_src>
import jax
import jax.numpy as jnp
from jax.experimental import pallas as pl
from jax.experimental.pallas import tpu as pltpu


LANE_TILE = 8 * 1024  # batch lanes per grid step; sized against v7x VMEM


def mlp_kernel(xt_ref, p_ref, b2_ref, o_ref):
    xt = xt_ref[...]          # (1, T)   batch on lanes
    w1 = p_ref[:, 0:1]        # (H, 1)   hidden.weight column (n_feature == 1)
    b1 = p_ref[:, 1:2]        # (H, 1)   hidden.bias
    w2 = p_ref[:, 2:3]        # (H, 1)   predict.weight as a column (n_output == 1)
    b2 = b2_ref[0, 0]         # scalar   predict.bias (SMEM)

    # Layer 1: K=1 matmul as a VPU rank-1 broadcast:
    #   h[h, n] = relu(w1[h] * x[n] + b1[h])                      -> (H, T)
    h = jnp.maximum(w1 * xt + b1, 0.0)

    # Layer 2: output-width-1 matmul as VPU mul + XLU sublane reduce:
    #   y[n] = sum_h h[h, n] * w2[h] + b2                         -> (1, T)
    y = jnp.sum(h * w2, axis=0, keepdims=True) + b2

    o_ref[...] = y.astype(o_ref.dtype)


def net_forward(x, w1, b1, w2, b2):
    """Forward pass matching PyTorch `Net`.

    Args (PyTorch parameter layout):
      x : (N, n_feature) f32, n_feature == 1
      w1: (n_hidden, n_feature) -- hidden.weight
      b1: (n_hidden,)           -- hidden.bias
      w2: (n_output, n_hidden)  -- predict.weight, n_output == 1
      b2: (n_output,)           -- predict.bias
    Returns: (N, n_output) f32.
    """
    N, F = x.shape
    H = w1.shape[0]
    O = w2.shape[0]
    assert F == 1 and O == 1, "kernel is specialized to n_feature=1, n_output=1"

    # Pad batch up to a multiple of 128 (and of the lane tile if gridded),
    # and place it on the 128-lane axis.  Single pad op, no scatter.
    Np = ((N + 127) // 128) * 128
    tile = min(Np, LANE_TILE)
    Np = ((Np + tile - 1) // tile) * tile
    xt = jnp.pad(x[:, 0].astype(jnp.float32), (0, Np - N)).reshape(1, Np)

    # Pack per-hidden-unit params into one (H, 3) array: [w1 | b1 | w2^T].
    params = jnp.concatenate(
        [
            w1.astype(jnp.float32),                 # (H, 1)
            b1.reshape(H, 1).astype(jnp.float32),   # (H, 1)
            w2.reshape(H, 1).astype(jnp.float32),   # (H, 1)  valid since O == 1
        ],
        axis=1,
    )
    b2s = b2.reshape(1, 1).astype(jnp.float32)      # scalar -> SMEM

    grid = (Np // tile,)
    yt = pl.pallas_call(
        mlp_kernel,
        out_shape=jax.ShapeDtypeStruct((1, Np), jnp.float32),
        grid=grid,
        in_specs=[
            pl.BlockSpec((1, tile), lambda i: (0, i),
                         memory_space=pltpu.MemorySpace.VMEM),
            pl.BlockSpec((H, 3), lambda i: (0, 0),
                         memory_space=pltpu.MemorySpace.VMEM),
            pl.BlockSpec(memory_space=pltpu.MemorySpace.SMEM),
        ],
        out_specs=pl.BlockSpec((1, tile), lambda i: (0, i),
                               memory_space=pltpu.MemorySpace.VMEM),
        compiler_params=pltpu.CompilerParams(
            dimension_semantics=("parallel",)),
    )(xt, params, b2s)

    # Drop the padded lanes and restore (N, n_output).
    return yt[0, :N].reshape(N, O)


def init_params(key, n_feature, n_hidden, n_output):
    """PyTorch-default-style init: U(-1/sqrt(fan_in), 1/sqrt(fan_in)).
    Parameters are stored in PyTorch layout."""
    k1, k2, k3, k4 = jax.random.split(key, 4)
    bound1 = 1.0 / jnp.sqrt(jnp.float32(n_feature))
    bound2 = 1.0 / jnp.sqrt(jnp.float32(n_hidden))
    w1 = jax.random.uniform(k1, (n_hidden, n_feature), jnp.float32, -bound1, bound1)
    b1 = jax.random.uniform(k2, (n_hidden,), jnp.float32, -bound1, bound1)
    w2 = jax.random.uniform(k3, (n_output, n_hidden), jnp.float32, -bound2, bound2)
    b2 = jax.random.uniform(k4, (n_output,), jnp.float32, -bound2, bound2)
    return w1, b1, w2, b2


if __name__ == "__main__":
    # Match the reference script: x = unsqueeze(linspace(-1, 1, 100), dim=1)
    N, n_feature, n_hidden, n_output = 100, 1, 32, 1

    x = jnp.expand_dims(jnp.linspace(-1.0, 1.0, N, dtype=jnp.float32), axis=1)

    key = jax.random.PRNGKey(0)
    w1, b1, w2, b2 = init_params(key, n_feature, n_hidden, n_output)

    out = net_forward(x, w1, b1, w2, b2)
    out = jax.block_until_ready(out)

    # Correctness check against a plain-JAX reference of the same forward pass
    # (PyTorch layout: y = relu(x @ W1^T + b1) @ W2^T + b2).
    ref = jnp.maximum(x @ w1.T + b1[None, :], 0.0) @ w2.T + b2[None, :]
    assert out.shape == (N, n_output)
    assert jnp.allclose(out, ref, atol=1e-5, rtol=1e-5)

    print("KERNEL_OK")
</pallas_src>

<mosaic_0001>
module attributes {stable_mosaic.version = 11 : i64} {
  func.func @mlp_kernel(%arg0: i32, %arg1: memref<1x128xf32, #tpu.memory_space<vmem>>, %arg2: memref<32x3xf32, #tpu.memory_space<vmem>>, %arg3: memref<1x1xf32, #tpu.memory_space<smem>>, %arg4: memref<1x128xf32, #tpu.memory_space<vmem>>) attributes {dimension_semantics = [#tpu.dimension_semantics<parallel>], iteration_bounds = array<i64: 1>, scalar_prefetch = 0 : i64, scratch_operands = 0 : i64, tpu.core_type = #tpu.core_type<tc>, window_params = [{transform_indices = @transform_0, window_bounds = array<i64: 1, 128>}, {pipeline_mode = #tpu.pipeline_mode<synchronous>, transform_indices = @transform_1, window_bounds = array<i64: 32, 3>}, {transform_indices = @transform_2, window_bounds = array<i64: 1, 1>}, {transform_indices = @transform_3, window_bounds = array<i64: 1, 128>}]} {
    %c0 = arith.constant 0 : index
    %c0_0 = arith.constant 0 : index
    %0 = vector.load %arg1[%c0, %c0_0] : memref<1x128xf32, #tpu.memory_space<vmem>>, vector<1x128xf32>
    %c0_1 = arith.constant 0 : index
    %c0_2 = arith.constant 0 : index
    %1 = vector.load %arg2[%c0_1, %c0_2] : memref<32x3xf32, #tpu.memory_space<vmem>>, vector<32x1xf32>
    %c0_3 = arith.constant 0 : index
    %c1 = arith.constant 1 : index
    %2 = vector.load %arg2[%c0_3, %c1] : memref<32x3xf32, #tpu.memory_space<vmem>>, vector<32x1xf32>
    %c0_4 = arith.constant 0 : index
    %c2 = arith.constant 2 : index
    %3 = vector.load %arg2[%c0_4, %c2] : memref<32x3xf32, #tpu.memory_space<vmem>>, vector<32x1xf32>
    %c0_5 = arith.constant 0 : index
    %c0_6 = arith.constant 0 : index
    %4 = memref.load %arg3[%c0_5, %c0_6] : memref<1x1xf32, #tpu.memory_space<smem>>
    %5 = vector.broadcast %1 : vector<32x1xf32> to vector<32x128xf32>
    %6 = vector.broadcast %0 : vector<1x128xf32> to vector<32x128xf32>
    %7 = arith.mulf %5, %6 : vector<32x128xf32>
    %8 = vector.broadcast %2 : vector<32x1xf32> to vector<32x128xf32>
    %9 = arith.addf %7, %8 : vector<32x128xf32>
    %cst = arith.constant 0.000000e+00 : f32
    %10 = vector.broadcast %cst : f32 to vector<32x128xf32>
    %11 = arith.maximumf %9, %10 : vector<32x128xf32>
    %12 = vector.broadcast %3 : vector<32x1xf32> to vector<32x128xf32>
    %13 = arith.mulf %11, %12 : vector<32x128xf32>
    %cst_7 = arith.constant dense<0.000000e+00> : vector<128xf32>
    %14 = vector.multi_reduction <add>, %13, %cst_7 [0] : vector<32x128xf32> to vector<128xf32>
    %15 = vector.shape_cast %14 : vector<128xf32> to vector<1x128xf32>
    %16 = vector.broadcast %4 : f32 to vector<1x128xf32>
    %17 = arith.addf %15, %16 : vector<1x128xf32>
    %c0_8 = arith.constant 0 : index
    %c0_9 = arith.constant 0 : index
    %18 = vector.load %arg4[%c0_8, %c0_9] : memref<1x128xf32, #tpu.memory_space<vmem>>, vector<1x128xf32>
    tpu.vector_store %arg4[%c0_8, %c0_9], %17 {strides = array<i32>} : memref<1x128xf32, #tpu.memory_space<vmem>>, vector<1x128xf32>,
    return
  }
  func.func @transform_0(%arg0: i32) -> (i32, i32) {
    %c0_i32 = arith.constant 0 : i32
    %c0_i32_0 = arith.constant 0 : i32
    return %c0_i32, %arg0 : i32, i32
  }
  func.func @transform_1(%arg0: i32) -> (i32, i32) {
    %c0_i32 = arith.constant 0 : i32
    %c0_i32_0 = arith.constant 0 : i32
    %c0_i32_1 = arith.constant 0 : i32
    return %c0_i32, %c0_i32_0 : i32, i32
  }
  func.func @transform_2(%arg0: i32) -> (i32, i32) {
    %c0_i32 = arith.constant 0 : i32
    %c0_i32_0 = arith.constant 0 : i32
    %c0_i32_1 = arith.constant 0 : i32
    return %c0_i32, %c0_i32_0 : i32, i32
  }
  func.func @transform_3(%arg0: i32) -> (i32, i32) {
    %c0_i32 = arith.constant 0 : i32
    %c0_i32_0 = arith.constant 0 : i32
    return %c0_i32, %arg0 : i32, i32
  }
}

</mosaic_0001>

<bundles_post_ra>
// kernel: tpu_custom_call.1
= control target key start
LH: loop header
LB: loop body
LE: loop exit
PB: predicated region body
PF: predicated region fallthrough
CT: control target
= control target key end

     0   :  { %v159_v2 = vmov 0   ;;  %s213_s0 = inlined_call_operand.vmem [shape: f32[1,128], index: 0, kind: input, shape index: {}]   ;;  %s214_s1 = inlined_call_operand.vmem [shape: f32[32,3], index: 1, kind: input, shape index: {}]   ;;  %s215_s2 = inlined_call_operand.<no memory space> [shape: f32[1,1], index: 2, kind: input, shape index: {}]   ;;  %s216_s3 = inlined_call_operand.hbm [shape: f32[1,128], index: 3, kind: output, shape index: {}]  }
   0x1   :  { %v19_v0 = vld [vmem:[%s214_s1 + $0x10] sm:$0xff]  ;;  %v17_v1 = vld [vmem:[%s214_s1] sm:$0xff]  ;;  %128 = vset.pattern.permute.xlu1 %v159_v2  ;;  %127 = vset.pattern.permute.xlu0 %v159_v2 }
   0x2   :  { %9 = vsyncpa [#allocation4], 0  ;;  %34 = vperm.xlu1 %128, %v19_v0   ;;  %24 = vperm.xlu0 %127, %v17_v1   ;;  %v18_v3 = vld [vmem:[%s214_s1 + $0x8] sm:$0xff]  ;;  %v160_v4 = vmov 1   ;;  %v20_v5 = vld [vmem:[%s214_s1 + $0x18] sm:$0xff]  ;;  %v161_v6 = vmov 2   ;;  %v105_v44 = vstv %s215_s2 }
   0x3   :  { %v122_v13 = vld [vmem:[%s213_s0] ss:$0 sm:$0xff]  ;;  %s162_s22 = smov [#allocation3]  }
   0x4   :  { %s114_s23 = sshll.u32 %s162_s22, 4  ;;  %s115_s23 = int_to_ptr.vmem [resolvable:$true] %s114_s23 }
   0x5   :  { %s135_s24 = scalar_lea.vmem %s115_s23, 16  ;;  %s139_s25 = scalar_lea.vmem %s115_s23, 32 }
   0x6   :  { %129 = vset.pattern.permute.xlu1 %v160_v4  ;;  %29 = vperm.xlu0 %127, %v18_v3   ;;  %p136_p0 = scmp.ne.s32.totalorder %s115_s23, %s135_s24  ;;  %p140_p1 = scmp.lt.s32.totalorder %s115_s23, %s115_s23 }
   0x7   :  { %53 = vperm.xlu1 %129, %v17_v1   ;;  %p141_p2 = scmp.lt.s32.totalorder %s139_s25, %s135_s24 }
   0x9   :  { %p142_p3 = por %p141_p2, %p140_p1 }
   0xa   :  { %130 = vset.pattern.permute.xlu0 %v160_v4 }
   0xb   :  { %131 = vset.pattern.permute.xlu1 %v159_v2  ;;  %57 = vperm.xlu0 %130, %v18_v3   ;;  %p143_p4 = pnand %p142_p3, %p136_p0 }
   0xc   :  { %39 = vperm.xlu1 %131, %v20_v5  }
   0xf   :  { %65 = vperm.xlu0 %130, %v20_v5  }
  0x10   :  { %132 = vset.pattern.permute.xlu1 %v160_v4 }
  0x11   :  { %61 = vperm.xlu1 %132, %v19_v0  }
  0x13   :  { %134 = vset.pattern.permute.xlu0 %v161_v6 }
  0x14   :  { %81 = vperm.xlu0 %134, %v18_v3  }
  0x15   :  { %133 = vset.pattern.permute.xlu1 %v161_v6 }
  0x16   :  { %77 = vperm.xlu1 %133, %v17_v1  }
  0x1a   :  { %85 = vperm.xlu1 %133, %v19_v0  }
  0x1e   :  { %89 = vperm.xlu1 %133, %v20_v5  }
  0x81   :  { %v35_v7 = vpop.permute.xlu1 %34  ;;  %v25_v8 = vpop.permute.xlu0 %24 }
  0x82   :  { %v48_v14 = vmul.f32 %v122_v13, %v25_v8  ;;  %v50_v18 = vmul.f32 %v122_v13, %v35_v7 }
  0x85   :  { %v30_v9 = vpop.permute.xlu0 %29 }
  0x86   :  { %v54_v10 = vpop.permute.xlu1 %53  ;;  %v49_v15 = vmul.f32 %v122_v13, %v30_v9 }
  0x87   :  { %v68_v19 = vadd.f32 %v54_v10, %v48_v14 }
  0x89   :  { %v72_v24 = vmax.f32 %v68_v19, 0.0 }
  0x8a   :  { %v58_v11 = vpop.permute.xlu0 %57 }
  0x8b   :  { %v40_v12 = vpop.permute.xlu1 %39  ;;  %v69_v20 = vadd.f32 %v58_v11, %v49_v15 }
  0x8c   :  { %v51_v21 = vmul.f32 %v122_v13, %v40_v12 }
  0x8d   :  { %v73_v26 = vmax.f32 %v69_v20, 0.0 }
  0x8e   :  { %v66_v17 = vpop.permute.xlu0 %65 }
  0x8f   :  { %v71_v27 = vadd.f32 %v66_v17, %v51_v21 }
  0x90   :  { %v62_v16 = vpop.permute.xlu1 %61 }
  0x91   :  { %v70_v22 = vadd.f32 %v62_v16, %v50_v18  ;;  %v75_v33 = vmax.f32 %v71_v27, 0.0 }
  0x93   :  { %v82_v25 = vpop.permute.xlu0 %81  ;;  %v74_v28 = vmax.f32 %v70_v22, 0.0 }
  0x94   :  { %v93_v31 = vmul.f32 %v82_v25, %v73_v26 }
  0x95   :  { %v78_v23 = vpop.permute.xlu1 %77 }
  0x96   :  { %v92_v29 = vmul.f32 %v78_v23, %v72_v24 }
  0x98   :  { %v96_v34 = vadd.f32 %v93_v31, %v92_v29 }
  0x99   :  { %v86_v30 = vpop.permute.xlu1 %85 }
  0x9a   :  { %v94_v32 = vmul.f32 %v86_v30, %v74_v28 }
  0x9c   :  { %v97_v36 = vadd.f32 %v96_v34, %v94_v32 }
  0x9d   :  { %v90_v35 = vpop.permute.xlu1 %89 }
  0x9e   :  { %v95_v37 = vmul.f32 %v90_v35, %v75_v33 }
  0xa0   :  { %v98_v38 = vadd.f32 %v97_v36, %v95_v37 }
  0xa2   :  { %v99_v39 = vrot.slane %v98_v38, 4 }
  0xa4   :  { %v100_v40 = vadd.f32 %v99_v39, %v98_v38 }
  0xa6   :  { %v101_v41 = vrot.slane %v100_v40, 2 }
  0xa8   :  { %v102_v42 = vadd.f32 %v101_v41, %v100_v40 }
  0xaa   :  { %v103_v43 = vrot.slane %v102_v42, 1 }
  0xac   :  { %v104_v45 = vadd.f32 %v103_v43, %v102_v42 }
  0xae   :  { %v106_v46 = vadd.f32 %v105_v44, %v104_v45 }
  0xb0   :  { %107 = vst [vmem:[#allocation3] sm:$0x1] %v106_v46 }
  0xb1   :  { %146 = shalt.err (!%p143_p4)
}
  0xb2   :  { %s147_s28 = scalar_lea.hbm %s216_s3, 16 }
  0xb3   :  { %p148_p5 = scmp.ne.s32.totalorder %s216_s3, %s147_s28  ;;  %p151_p6 = scmp.lt.u32.totalorder %s147_s28, %s216_s3 }
  0xb5   :  { %p153_p7 = pnand %p151_p6, %p148_p5 }
  0xb7   :  { %156 = shalt.err (!%p153_p7)
}
  0xb8   :  { %117 = dma.vmem_to_hbm [thread:$0]  %s115_s23, 16, %s216_s3, [#allocation4]  }
  0xb9   :  { %157 = dma.done.wait [#allocation4], 16  }
  0xba   :  { %158 = vsyncadd [#allocation4], 4294967280 }
  0xbb   :  { %121 = vsyncpa [#allocation4], 1 }

</bundles_post_ra>
